<compile_context>
chip_gen: v7x
topology: tpu7x:2x2x1
jax: 0.10.0
libtpu: 0.0.40
codegen_flags: <defaults>
</compile_context>

<pallas_src>
import functools

import jax
import jax.numpy as jnp
from jax import lax
from jax.experimental import pallas as pl
from jax.experimental.pallas import tpu as pltpu


def _make_kernel(TH, W1, Cin, K):
    """Fused depthwise + pointwise kernel for static shapes (stride-1 inner conv)."""

    def kernel(x_ref, wdw_ref, wpw_ref, o_ref):
        # x_ref  : (Hp, Wp*Cin)       padded input image for one batch, W*C on lanes
        # wdw_ref: (K*K, W1*Cin)      depthwise tap weights, pre-tiled across W1
        # wpw_ref: (W1*Cin, W1*Cout)  block-diagonal pointwise weights kron(I_W1, Wpw)
        # o_ref  : (TH, W1*Cout)      one lane-dense row tile of the output
        row_base = pl.program_id(1) * TH
        if TH % 8 == 0:
            row_base = pl.multiple_of(row_base, 8)

        acc = jnp.zeros((TH, W1 * Cin), jnp.float32)
        # Depthwise conv: K*K statically unrolled taps.  kh shifts are dynamic sublane
        # slices, kw shifts are small static lane offsets; multiply/add on the VPU at
        # (near) full lane utilization.
        for kh in range(K):
            for kw in range(K):
                patch = x_ref[pl.ds(row_base + kh, TH),
                              pl.ds(kw * Cin, W1 * Cin)].astype(jnp.float32)
                acc = acc + patch * wdw_ref[kh * K + kw, :].astype(jnp.float32)

        # Pointwise 1x1 conv as a single MXU matmul; the block-diagonal weight keeps
        # the result in the (TH, W1*Cout) lane-dense layout -> unmasked full stores.
        out = jnp.dot(acc, wpw_ref[...].astype(jnp.float32),
                      preferred_element_type=jnp.float32)
        o_ref[...] = out.astype(o_ref.dtype)

    return kernel


def depthwise_separable_conv2d(x_nchw, w_dw, w_pw, *, stride=1, padding=0):
    """
    x_nchw: (N, Cin, H, W)      -- PyTorch input layout
    w_dw:   (Cin, 1, K, K)      -- depthwise Conv2d weight (groups=Cin)
    w_pw:   (Cout, Cin, 1, 1)   -- pointwise Conv2d weight
    returns (N, Cout, Hout, Wout), matching the PyTorch module (bias=False default).
    """
    # TODO(synk): bias=True (per-channel depthwise / per-out-channel pointwise bias)
    # is not implemented; the module default bias=False is what is exercised here.
    N, Cin, H, W = x_nchw.shape
    K = w_dw.shape[-1]
    Cout = w_pw.shape[0]
    Hout = (H + 2 * padding - K) // stride + 1
    Wout = (W + 2 * padding - K) // stride + 1

    # Wrapper-side layout prep (cheap at these sizes; in a real model keep activations
    # NHWC end-to-end to avoid the extra HBM pass of this transpose).
    x_nhwc = jnp.transpose(x_nchw, (0, 2, 3, 1))
    x_pad = jnp.pad(x_nhwc, ((0, 0), (padding, padding), (padding, padding), (0, 0)))
    Hp, Wp = x_pad.shape[1], x_pad.shape[2]
    x_flat = x_pad.reshape(N, Hp, Wp * Cin)             # W*C interleaved on the lane axis

    # The kernel always runs the stride-1 conv over the padded input; for stride>1 the
    # wrapper subsamples afterwards (exact, since the pointwise stage is 1x1).
    # TODO(synk): real stride>1 workloads should pre-arrange via space-to-depth instead
    # of computing the full-resolution output and subsampling.
    H1 = Hp - K + 1
    W1 = Wp - K + 1

    # Depthwise weights: one row per (kh, kw) tap, tiled across W1 so they broadcast
    # directly against the (H, W*Cin) activation layout.
    wdw_rows = jnp.transpose(w_dw[:, 0, :, :], (1, 2, 0)).reshape(K * K, Cin)
    wdw_tiled = jnp.tile(wdw_rows, (1, W1))              # (K*K, W1*Cin)

    # Pointwise weights as a block-diagonal matrix: one matmul maps (TH, W1*Cin) ->
    # (TH, W1*Cout) with no in-kernel relayout.  (Good for small channels; for large
    # Cin/Cout use plain NHWC with an (H*W, Cin) x (Cin, Cout) matmul, which is already
    # lane-dense in that regime.)
    wpw_mat = jnp.transpose(w_pw[:, :, 0, 0], (1, 0))    # (Cin, Cout)
    wpw_block = jnp.kron(jnp.eye(W1, dtype=wpw_mat.dtype), wpw_mat)  # (W1*Cin, W1*Cout)

    # Row tile: 8-row tiles give sublane-aligned, pipelined output stores and enough
    # grid points for both v7x TensorCores even at small batch.
    TH = 8 if H1 % 8 == 0 else H1
    grid = (N, H1 // TH)

    kernel = _make_kernel(TH, W1, Cin, K)

    # Explicit VMEM budget (double-buffered blocks + weights); matters on v7x (64 MiB).
    est_bytes = 4 * (2 * Hp * Wp * Cin            # input block  (x2 buffering)
                     + 2 * TH * W1 * Cout         # output block (x2 buffering)
                     + 2 * K * K * W1 * Cin       # depthwise weights
                     + 2 * W1 * Cin * W1 * Cout)  # block-diag pointwise weights
    vmem_limit = int(min(max(2 * est_bytes, 8 * 2 ** 20), 64 * 2 ** 20))

    out_flat = pl.pallas_call(
        kernel,
        out_shape=jax.ShapeDtypeStruct((N, H1, W1 * Cout), x_nchw.dtype),
        grid_spec=pltpu.PrefetchScalarGridSpec(
            num_scalar_prefetch=0,
            grid=grid,
            in_specs=[
                # Full padded image per batch element; constant block index along the
                # row-tile axis -> DMA'd from HBM only once per batch element.
                pl.BlockSpec((None, Hp, Wp * Cin), lambda n, t: (n, 0, 0)),
                # Weights: constant block index -> fetched once, stay resident.
                pl.BlockSpec((K * K, W1 * Cin), lambda n, t: (0, 0)),
                pl.BlockSpec((W1 * Cin, W1 * Cout), lambda n, t: (0, 0)),
            ],
            out_specs=pl.BlockSpec((None, TH, W1 * Cout), lambda n, t: (n, t, 0)),
        ),
        compiler_params=pltpu.CompilerParams(
            dimension_semantics=("parallel", "parallel"),
            vmem_limit_bytes=vmem_limit,
        ),
    )(x_flat, wdw_tiled, wpw_block)

    out_nhwc = out_flat.reshape(N, H1, W1, Cout)
    if stride > 1:
        out_nhwc = out_nhwc[:, ::stride, ::stride, :]    # exactly (N, Hout, Wout, Cout)
    return jnp.transpose(out_nhwc, (0, 3, 1, 2))         # back to NCHW (PyTorch layout)


def _reference(x_nchw, w_dw, w_pw, *, stride=1, padding=0):
    """Pure-JAX reference (lax.conv) replicating the PyTorch forward."""
    Cin = x_nchw.shape[1]
    dw = lax.conv_general_dilated(
        x_nchw, w_dw,
        window_strides=(stride, stride),
        padding=[(padding, padding), (padding, padding)],
        dimension_numbers=("NCHW", "OIHW", "NCHW"),
        feature_group_count=Cin)
    pw = lax.conv_general_dilated(
        dw, w_pw,
        window_strides=(1, 1),
        padding=[(0, 0), (0, 0)],
        dimension_numbers=("NCHW", "OIHW", "NCHW"))
    return pw


if __name__ == "__main__":
    # Module config (bias=False for both convs, the PyTorch constructor default).
    N, Cin, H, W = 2, 4, 16, 16
    Cout, K, stride, padding = 8, 3, 1, 1

    key = jax.random.PRNGKey(0)
    kx, kdw, kpw = jax.random.split(key, 3)
    x = jax.random.normal(kx, (N, Cin, H, W), dtype=jnp.float32)
    w_dw = jax.random.normal(kdw, (Cin, 1, K, K), dtype=jnp.float32) * 0.2
    w_pw = jax.random.normal(kpw, (Cout, Cin, 1, 1), dtype=jnp.float32) * 0.2

    fn = jax.jit(functools.partial(depthwise_separable_conv2d,
                                   stride=stride, padding=padding))
    out = jax.block_until_ready(fn(x, w_dw, w_pw))

    ref = _reference(x, w_dw, w_pw, stride=stride, padding=padding)
    assert out.shape == ref.shape, (out.shape, ref.shape)
    assert jnp.allclose(out, ref, atol=1e-4, rtol=1e-4), "mismatch vs reference conv"

    print("KERNEL_OK")
</pallas_src>

<mosaic_0001>
module attributes {stable_mosaic.version = 11 : i64} {
  func.func @kernel(%arg0: i32, %arg1: i32, %arg2: memref<1x18x72xf32, #tpu.memory_space<vmem>>, %arg3: memref<9x64xf32, #tpu.memory_space<vmem>>, %arg4: memref<64x128xf32, #tpu.memory_space<vmem>>, %arg5: memref<1x8x128xf32, #tpu.memory_space<vmem>>) attributes {dimension_semantics = [#tpu.dimension_semantics<parallel>, #tpu.dimension_semantics<parallel>], iteration_bounds = array<i64: 2, 2>, scalar_prefetch = 0 : i64, scratch_operands = 0 : i64, tpu.core_type = #tpu.core_type<tc>, window_params = [{transform_indices = @transform_0, window_bounds = array<i64: 1, 18, 72>}, {pipeline_mode = #tpu.pipeline_mode<synchronous>, transform_indices = @transform_1, window_bounds = array<i64: 9, 64>}, {pipeline_mode = #tpu.pipeline_mode<synchronous>, transform_indices = @transform_2, window_bounds = array<i64: 64, 128>}, {transform_indices = @transform_3, window_bounds = array<i64: 1, 8, 128>}]} {
    %c8_i32 = arith.constant 8 : i32
    %0 = arith.muli %arg1, %c8_i32 : i32
    %1 = tpu.assume_multiple %0, 8 : i32
    %cst = arith.constant 0.000000e+00 : f32
    %2 = vector.broadcast %cst : f32 to vector<8x64xf32>
    %c0_i32 = arith.constant 0 : i32
    %3 = arith.addi %1, %c0_i32 : i32
    %c0 = arith.constant 0 : index
    %4 = arith.index_cast %3 : i32 to index
    %c0_0 = arith.constant 0 : index
    %5 = vector.load %arg2[%c0, %4, %c0_0] : memref<1x18x72xf32, #tpu.memory_space<vmem>>, vector<1x8x64xf32>
    %6 = vector.shape_cast %5 : vector<1x8x64xf32> to vector<8x64xf32>
    %c0_1 = arith.constant 0 : index
    %c0_2 = arith.constant 0 : index
    %7 = vector.load %arg3[%c0_1, %c0_2] : memref<9x64xf32, #tpu.memory_space<vmem>>, vector<1x64xf32>
    %8 = vector.shape_cast %7 : vector<1x64xf32> to vector<64xf32>
    %9 = vector.shape_cast %8 : vector<64xf32> to vector<1x64xf32>
    %10 = vector.broadcast %9 : vector<1x64xf32> to vector<8x64xf32>
    %11 = arith.mulf %6, %10 : vector<8x64xf32>
    %12 = arith.addf %2, %11 : vector<8x64xf32>
    %c0_i32_3 = arith.constant 0 : i32
    %13 = arith.addi %1, %c0_i32_3 : i32
    %c0_4 = arith.constant 0 : index
    %14 = arith.index_cast %13 : i32 to index
    %c4 = arith.constant 4 : index
    %15 = vector.load %arg2[%c0_4, %14, %c4] : memref<1x18x72xf32, #tpu.memory_space<vmem>>, vector<1x8x64xf32>
    %16 = vector.shape_cast %15 : vector<1x8x64xf32> to vector<8x64xf32>
    %c1 = arith.constant 1 : index
    %c0_5 = arith.constant 0 : index
    %17 = vector.load %arg3[%c1, %c0_5] : memref<9x64xf32, #tpu.memory_space<vmem>>, vector<1x64xf32>
    %18 = vector.shape_cast %17 : vector<1x64xf32> to vector<64xf32>
    %19 = vector.shape_cast %18 : vector<64xf32> to vector<1x64xf32>
    %20 = vector.broadcast %19 : vector<1x64xf32> to vector<8x64xf32>
    %21 = arith.mulf %16, %20 : vector<8x64xf32>
    %22 = arith.addf %12, %21 : vector<8x64xf32>
    %c0_i32_6 = arith.constant 0 : i32
    %23 = arith.addi %1, %c0_i32_6 : i32
    %c0_7 = arith.constant 0 : index
    %24 = arith.index_cast %23 : i32 to index
    %c8 = arith.constant 8 : index
    %25 = vector.load %arg2[%c0_7, %24, %c8] : memref<1x18x72xf32, #tpu.memory_space<vmem>>, vector<1x8x64xf32>
    %26 = vector.shape_cast %25 : vector<1x8x64xf32> to vector<8x64xf32>
    %c2 = arith.constant 2 : index
    %c0_8 = arith.constant 0 : index
    %27 = vector.load %arg3[%c2, %c0_8] : memref<9x64xf32, #tpu.memory_space<vmem>>, vector<1x64xf32>
    %28 = vector.shape_cast %27 : vector<1x64xf32> to vector<64xf32>
    %29 = vector.shape_cast %28 : vector<64xf32> to vector<1x64xf32>
    %30 = vector.broadcast %29 : vector<1x64xf32> to vector<8x64xf32>
    %31 = arith.mulf %26, %30 : vector<8x64xf32>
    %32 = arith.addf %22, %31 : vector<8x64xf32>
    %c1_i32 = arith.constant 1 : i32
    %33 = arith.addi %1, %c1_i32 : i32
    %c0_9 = arith.constant 0 : index
    %34 = arith.index_cast %33 : i32 to index
    %c0_10 = arith.constant 0 : index
    %35 = vector.load %arg2[%c0_9, %34, %c0_10] : memref<1x18x72xf32, #tpu.memory_space<vmem>>, vector<1x8x64xf32>
    %36 = vector.shape_cast %35 : vector<1x8x64xf32> to vector<8x64xf32>
    %c3 = arith.constant 3 : index
    %c0_11 = arith.constant 0 : index
    %37 = vector.load %arg3[%c3, %c0_11] : memref<9x64xf32, #tpu.memory_space<vmem>>, vector<1x64xf32>
    %38 = vector.shape_cast %37 : vector<1x64xf32> to vector<64xf32>
    %39 = vector.shape_cast %38 : vector<64xf32> to vector<1x64xf32>
    %40 = vector.broadcast %39 : vector<1x64xf32> to vector<8x64xf32>
    %41 = arith.mulf %36, %40 : vector<8x64xf32>
    %42 = arith.addf %32, %41 : vector<8x64xf32>
    %c1_i32_12 = arith.constant 1 : i32
    %43 = arith.addi %1, %c1_i32_12 : i32
    %c0_13 = arith.constant 0 : index
    %44 = arith.index_cast %43 : i32 to index
    %c4_14 = arith.constant 4 : index
    %45 = vector.load %arg2[%c0_13, %44, %c4_14] : memref<1x18x72xf32, #tpu.memory_space<vmem>>, vector<1x8x64xf32>
    %46 = vector.shape_cast %45 : vector<1x8x64xf32> to vector<8x64xf32>
    %c4_15 = arith.constant 4 : index
    %c0_16 = arith.constant 0 : index
    %47 = vector.load %arg3[%c4_15, %c0_16] : memref<9x64xf32, #tpu.memory_space<vmem>>, vector<1x64xf32>
    %48 = vector.shape_cast %47 : vector<1x64xf32> to vector<64xf32>
    %49 = vector.shape_cast %48 : vector<64xf32> to vector<1x64xf32>
    %50 = vector.broadcast %49 : vector<1x64xf32> to vector<8x64xf32>
    %51 = arith.mulf %46, %50 : vector<8x64xf32>
    %52 = arith.addf %42, %51 : vector<8x64xf32>
    %c1_i32_17 = arith.constant 1 : i32
    %53 = arith.addi %1, %c1_i32_17 : i32
    %c0_18 = arith.constant 0 : index
    %54 = arith.index_cast %53 : i32 to index
    %c8_19 = arith.constant 8 : index
    %55 = vector.load %arg2[%c0_18, %54, %c8_19] : memref<1x18x72xf32, #tpu.memory_space<vmem>>, vector<1x8x64xf32>
    %56 = vector.shape_cast %55 : vector<1x8x64xf32> to vector<8x64xf32>
    %c5 = arith.constant 5 : index
    %c0_20 = arith.constant 0 : index
    %57 = vector.load %arg3[%c5, %c0_20] : memref<9x64xf32, #tpu.memory_space<vmem>>, vector<1x64xf32>
    %58 = vector.shape_cast %57 : vector<1x64xf32> to vector<64xf32>
    %59 = vector.shape_cast %58 : vector<64xf32> to vector<1x64xf32>
    %60 = vector.broadcast %59 : vector<1x64xf32> to vector<8x64xf32>
    %61 = arith.mulf %56, %60 : vector<8x64xf32>
    %62 = arith.addf %52, %61 : vector<8x64xf32>
    %c2_i32 = arith.constant 2 : i32
    %63 = arith.addi %1, %c2_i32 : i32
    %c0_21 = arith.constant 0 : index
    %64 = arith.index_cast %63 : i32 to index
    %c0_22 = arith.constant 0 : index
    %65 = vector.load %arg2[%c0_21, %64, %c0_22] : memref<1x18x72xf32, #tpu.memory_space<vmem>>, vector<1x8x64xf32>
    %66 = vector.shape_cast %65 : vector<1x8x64xf32> to vector<8x64xf32>
    %c6 = arith.constant 6 : index
    %c0_23 = arith.constant 0 : index
    %67 = vector.load %arg3[%c6, %c0_23] : memref<9x64xf32, #tpu.memory_space<vmem>>, vector<1x64xf32>
    %68 = vector.shape_cast %67 : vector<1x64xf32> to vector<64xf32>
    %69 = vector.shape_cast %68 : vector<64xf32> to vector<1x64xf32>
    %70 = vector.broadcast %69 : vector<1x64xf32> to vector<8x64xf32>
    %71 = arith.mulf %66, %70 : vector<8x64xf32>
    %72 = arith.addf %62, %71 : vector<8x64xf32>
    %c2_i32_24 = arith.constant 2 : i32
    %73 = arith.addi %1, %c2_i32_24 : i32
    %c0_25 = arith.constant 0 : index
    %74 = arith.index_cast %73 : i32 to index
    %c4_26 = arith.constant 4 : index
    %75 = vector.load %arg2[%c0_25, %74, %c4_26] : memref<1x18x72xf32, #tpu.memory_space<vmem>>, vector<1x8x64xf32>
    %76 = vector.shape_cast %75 : vector<1x8x64xf32> to vector<8x64xf32>
    %c7 = arith.constant 7 : index
    %c0_27 = arith.constant 0 : index
    %77 = vector.load %arg3[%c7, %c0_27] : memref<9x64xf32, #tpu.memory_space<vmem>>, vector<1x64xf32>
    %78 = vector.shape_cast %77 : vector<1x64xf32> to vector<64xf32>
    %79 = vector.shape_cast %78 : vector<64xf32> to vector<1x64xf32>
    %80 = vector.broadcast %79 : vector<1x64xf32> to vector<8x64xf32>
    %81 = arith.mulf %76, %80 : vector<8x64xf32>
    %82 = arith.addf %72, %81 : vector<8x64xf32>
    %c2_i32_28 = arith.constant 2 : i32
    %83 = arith.addi %1, %c2_i32_28 : i32
    %c0_29 = arith.constant 0 : index
    %84 = arith.index_cast %83 : i32 to index
    %c8_30 = arith.constant 8 : index
    %85 = vector.load %arg2[%c0_29, %84, %c8_30] : memref<1x18x72xf32, #tpu.memory_space<vmem>>, vector<1x8x64xf32>
    %86 = vector.shape_cast %85 : vector<1x8x64xf32> to vector<8x64xf32>
    %c8_31 = arith.constant 8 : index
    %c0_32 = arith.constant 0 : index
    %87 = vector.load %arg3[%c8_31, %c0_32] : memref<9x64xf32, #tpu.memory_space<vmem>>, vector<1x64xf32>
    %88 = vector.shape_cast %87 : vector<1x64xf32> to vector<64xf32>
    %89 = vector.shape_cast %88 : vector<64xf32> to vector<1x64xf32>
    %90 = vector.broadcast %89 : vector<1x64xf32> to vector<8x64xf32>
    %91 = arith.mulf %86, %90 : vector<8x64xf32>
    %92 = arith.addf %82, %91 : vector<8x64xf32>
    %c0_33 = arith.constant 0 : index
    %c0_34 = arith.constant 0 : index
    %93 = vector.load %arg4[%c0_33, %c0_34] : memref<64x128xf32, #tpu.memory_space<vmem>>, vector<64x128xf32>
    %cst_35 = arith.constant dense<0.000000e+00> : vector<8x128xf32>
    %94 = tpu.matmul %92, %93, %cst_35 {dimension_numbers = #tpu.dot_dimension_numbers<[1], [0], [0], [1], [0, 0, 1, 1], [], []>} : vector<8x64xf32>, vector<64x128xf32>, vector<8x128xf32> -> vector<8x128xf32>
    %c0_36 = arith.constant 0 : index
    %c0_37 = arith.constant 0 : index
    %c0_38 = arith.constant 0 : index
    %95 = vector.load %arg5[%c0_36, %c0_37, %c0_38] : memref<1x8x128xf32, #tpu.memory_space<vmem>>, vector<1x8x128xf32>
    %96 = vector.shape_cast %95 : vector<1x8x128xf32> to vector<8x128xf32>
    %97 = vector.shape_cast %94 : vector<8x128xf32> to vector<1x8x128xf32>
    tpu.vector_store %arg5[%c0_36, %c0_37, %c0_38], %97 {strides = array<i32>} : memref<1x8x128xf32, #tpu.memory_space<vmem>>, vector<1x8x128xf32>,
    return
  }
  func.func @transform_0(%arg0: i32, %arg1: i32) -> (i32, i32, i32) {
    %c0_i32 = arith.constant 0 : i32
    %c0_i32_0 = arith.constant 0 : i32
    %c0_i32_1 = arith.constant 0 : i32
    return %arg0, %c0_i32, %c0_i32_0 : i32, i32, i32
  }
  func.func @transform_1(%arg0: i32, %arg1: i32) -> (i32, i32) {
    %c0_i32 = arith.constant 0 : i32
    %c0_i32_0 = arith.constant 0 : i32
    %c0_i32_1 = arith.constant 0 : i32
    return %c0_i32, %c0_i32_0 : i32, i32
  }
  func.func @transform_2(%arg0: i32, %arg1: i32) -> (i32, i32) {
    %c0_i32 = arith.constant 0 : i32
    %c0_i32_0 = arith.constant 0 : i32
    %c0_i32_1 = arith.constant 0 : i32
    return %c0_i32, %c0_i32_0 : i32, i32
  }
  func.func @transform_3(%arg0: i32, %arg1: i32) -> (i32, i32, i32) {
    %c0_i32 = arith.constant 0 : i32
    %c0_i32_0 = arith.constant 0 : i32
    return %arg0, %arg1, %c0_i32 : i32, i32, i32
  }
}

</mosaic_0001>

<bundles_post_ra>
// kernel: depthwise_separable_conv2d.1
= control target key start
LH: loop header
LB: loop body
LE: loop exit
PB: predicated region body
PF: predicated region fallthrough
CT: control target
= control target key end

     0   :  { %s662_s12 = smov 0   ;;  %s664_s13 = smov 0   ;;  %s777_s0 = inlined_call_operand.vmem [shape: f32[2,18,72], index: 0, kind: input, shape index: {}]   ;;  %s778_s1 = inlined_call_operand.vmem [shape: f32[9,64], index: 1, kind: input, shape index: {}]   ;;  %s779_s2 = inlined_call_operand.vmem [shape: f32[64,128], index: 2, kind: input, shape index: {}]   ;;  %s780_s3 = inlined_call_operand.vmem [shape: f32[2,16,128], index: 3, kind: output, shape index: {}]  }
   0x1   :  { %s666_s14 = smov 0   ;;  %s668_s15 = smov 0  }
   0x2   :  { %s670_s16 = smov 0  }
   0x3 LB: > { %s22_s17 = sadd.s32 1, %s625_s14  ;;  %s25_s18 = sadd.s32 1, %s629_s15  ;;  %s633_s16 = sphi %s670_s16, %s13_s16   ;;  %s629_s15 = sphi %s668_s15, %s784_s15   ;;  %s625_s14 = sphi %s666_s14, %s783_s14   ;;  %s621_s13 = sphi %s664_s13, %s782_s13   ;;  %s617_s12 = sphi %s662_s12, %s781_s12  }
   0x4   : > { %p23_p0 = scmp.ge.s32.totalorder %s22_s17, 2  ;;  %p486_p1 = scmp.ge.s32.totalorder %s633_s16, 1 }
   0x5   : > { %p151_p2 = scmp.lt.s32.totalorder %s633_s16, 5 }
   0x6   : > { %s786_s17 = smov (%p23_p0, %s22_s17), 0  ;;  %s788_s18 = smov (!%p23_p0, %s25_s18), %s629_s15 }
   0x7   : > { %p152_p3 = pnand %p486_p1, %p151_p2  ;;  %p27_p4 = scmp.ge.s32.totalorder %s788_s18, 2 }
   0x8   : > { %v492_v0 = vld [vmem:[%s778_s1 + $0x1] ss:$0 sm:$0xff] (!%p152_p3)  ;;  %s635_s21 = smov (!%p152_p3), 4   ;;  %v497_v1 = vld [vmem:[%s778_s1 + $0x4] ss:$0 sm:$0xff] (!%p152_p3)  ;;  %s636_s28 = smov (!%p152_p3), 8  }
   0x9   : > { %s790_s18 = smov (%p27_p4, %s788_s18), 0  ;;  %155 = sbr.rel (%p152_p3) target bundleno = 473 (0x1d9), region = 32 }
   0xa   : > { %207 = vrot.lane.b32.xlu0 (!%p152_p3), %v492_v0, %s635_s21  ;;  %v493_v2 = vld [vmem:[%s778_s1 + $0x2] ss:$0 sm:$0xff] (!%p152_p3)  ;;  %247 = vrot.lane.b32.xlu1 (!%p152_p3), %v497_v1, %s635_s21  ;;  %v498_v3 = vld [vmem:[%s778_s1 + $0x5] ss:$0 sm:$0xff] (!%p152_p3)  ;;  %p178_p5 = scmp.lt.s32.totalorder (!%p152_p3), %s621_s13, 1  ;;  %v637_v8 = vmov (!%p152_p3), 0.0|0.0  }
   0xb   : > { %v502_v4 = vld [vmem:[%s778_s1 + $0x7] ss:$0 sm:$0xff] (!%p152_p3)  ;;  %v503_v5 = vld [vmem:[%s778_s1 + $0x8] ss:$0 sm:$0xff] (!%p152_p3)  ;;  %535 = vmatprep.subr.bf16.mxu0 (!%p152_p3), %v637_v8  ;;  %v313_v10 = vld [vmem:[%s779_s2 + $0x10] sm:$0xff] (!%p152_p3)  ;;  %s638_s8 = smov (!%p152_p3), 124  }
   0xc   : > { %v311_v6 = vld [vmem:[%s779_s2] sm:$0xff] (!%p152_p3)  ;;  %v312_v7 = vld [vmem:[%s779_s2 + $0x8] sm:$0xff] (!%p152_p3)  ;;  %v314_v11 = vld [vmem:[%s779_s2 + $0x18] sm:$0xff] (!%p152_p3)  ;;  %s639_s9 = smov (!%p152_p3), 120   ;;  %vm640_vm0 = vmmov (!%p152_p3), 0   ;;  %v641_v31 = vmov (!%p152_p3), 0.0  }
   0xd   : > { %v536_v9 = vpack.c.bf16 (!%p152_p3), %v312_v7, %v311_v6  ;;  %v539_v12 = vpack.c.bf16 (!%p152_p3), %v314_v11, %v313_v10  ;;  %v315_v14 = vld [vmem:[%s779_s2 + $0x20] sm:$0xff] (!%p152_p3)  ;;  %v316_v15 = vld [vmem:[%s779_s2 + $0x28] sm:$0xff] (!%p152_p3)  ;;  %v317_v21 = vld [vmem:[%s779_s2 + $0x30] sm:$0xff] (!%p152_p3)  ;;  %532 = vmatprep.mubr.msk.f32.mxu0 (!%p152_p3), %vm640_vm0, %v641_v31  ;;  %vm319_vm1 = vcmask (!%p152_p3), 523264   ;;  %p185_p6 = scmp.lt.s32.totalorder (!%p152_p3), %s617_s12, 1 }
   0xe   : > { %222 = vrot.lane.b32.xlu0 (!%p152_p3), %v493_v2, %s636_s28  ;;  %262 = vrot.lane.b32.xlu1 (!%p152_p3), %v498_v3, %s636_s28  ;;  %v542_v16 = vpack.c.bf16 (!%p152_p3), %v316_v15, %v315_v14  ;;  %v318_v22 = vld [vmem:[%s779_s2 + $0x38] sm:$0xff] (!%p152_p3)  ;;  %v491_v35 = vld [vmem:[%s778_s1] ss:$0 sm:$0xff] (!%p152_p3) }
   0xf   : > { %537 = vmatpush3.bf16.msra.mxu0 (!%p152_p3), %v536_v9  ;;  %v545_v24 = vpack.c.bf16 (!%p152_p3), %v318_v22, %v317_v21  ;;  %v496_v38 = vld [vmem:[%s778_s1 + $0x3] ss:$0 sm:$0xff] (!%p152_p3)  ;;  %v501_v43 = vld [vmem:[%s778_s1 + $0x6] ss:$0 sm:$0xff] (!%p152_p3) }
  0x10   : > { %s792_s13 = smov (!%p178_p5, %s621_s13), 1  ;;  %538 = vmatprep.subr.bf16.mxu0 %v637_v8 }
  0x11   : > { %s547_s6 = smul.u32 24, %s792_s13  ;;  %s488_s23 = sshll.u32 %s792_s13, 1 }
  0x12   : > { %287 = vrot.lane.b32.xlu0 %v502_v4, %s635_s21  ;;  %302 = vrot.lane.b32.xlu1 %v503_v5, %s636_s28  ;;  %s490_s21 = sshll.u32 %s617_s12, 3  ;;  %s794_s12 = smov (!%p185_p6, %s617_s12), 1 }
  0x13   : > { %s182_s20 = scalar_lea.vmem %s777_s0, %s547_s6  ;;  %540 = vmatpush3.bf16.msra.mxu0 %v539_v12  ;;  %s188_s24 = sadd.s32 %s488_s23, %s794_s12 }
  0x14   : > { %s192_s26 = scalar_lea.vmem %s182_s20, %s490_s21  ;;  %541 = vmatprep.subr.bf16.mxu0 %v637_v8  ;;  %s489_s25 = sshll.u32 %s188_s24, 3 }
  0x15   : > { %v193_v13 = vld [vmem:[%s192_s26] sm:$0xff]  ;;  %s190_s28 = scalar_lea.vmem %s780_s3, %s489_s25 }
  0x16   : > { %v495_v18 = vld [vmem:[%s192_s26 + $0x1] sm:$0xff]  ;;  %v199_v36 = vmul.f32 %v491_v35, %v193_v13 }
  0x17   : > { %543 = vmatpush3.bf16.msra.mxu0 %v542_v16  ;;  %v500_v28 = vld [vmem:[%s192_s26 + $0x2] sm:$0xff]  ;;  %v239_v40 = vmul.f32 %v496_v38, %v495_v18 }
  0x18   : > { %544 = vmatprep.subr.bf16.mxu0 %v637_v8  ;;  %v279_v48 = vmul.f32 %v501_v43, %v500_v28 }
  0x1b   : > { %546 = vmatpush3.bf16.msra.mxu0 %v545_v24 }
  0x7c   : > { %v208_v17 = vpop.permute.xlu0 %207  ;;  %v248_v20 = vpop.permute.xlu1 %247 }
  0x7d   : > { %v210_v19 = vmul.f32 %v208_v17, %v193_v13  ;;  %v250_v23 = vmul.f32 %v495_v18, %v248_v20 }
  0x7f   : > { %212 = vrot.lane.b32.xlu0 %v210_v19, %s638_s8 }
  0x80   : > { %v223_v25 = vpop.permute.xlu0 %222  ;;  %v263_v27 = vpop.permute.xlu1 %262 }
  0x81   : > { %v225_v26 = vmul.f32 %v223_v25, %v193_v13  ;;  %v265_v29 = vmul.f32 %v495_v18, %v263_v27 }
  0x83   : > { %227 = vrot.lane.b32.xlu1 %v225_v26, %s639_s9  ;;  %252 = vrot.lane.b32.xlu0 %v250_v23, %s638_s8 }
  0x84   : > { %v288_v30 = vpop.permute.xlu0 %287  ;;  %v303_v33 = vpop.permute.xlu1 %302 }
  0x85   : > { %v290_v32 = vmul.f32 %v500_v28, %v288_v30  ;;  %v305_v34 = vmul.f32 %v500_v28, %v303_v33 }
  0x87   : > { %267 = vrot.lane.b32.xlu1 %v265_v29, %s639_s9  ;;  %292 = vrot.lane.b32.xlu0 %v290_v32, %s638_s8 }
  0x8b   : > { %307 = vrot.lane.b32.xlu1 %v305_v34, %s639_s9 }
  0xf1   : > { %v213_v37 = vpop.permute.xlu0 %212 }
  0xf2   : > { %v215_v39 = vadd.f32 %v213_v37, %v199_v36 }
  0xf5   : > { %v228_v41 = vpop.permute.xlu1 %227  ;;  %v253_v45 = vpop.permute.xlu0 %252 }
  0xf6   : > { %v230_v42 = vadd.f32 %v228_v41, %v215_v39 }
  0xf8   : > { %v240_v44 = vadd.f32 %v239_v40, %v230_v42 }
  0xf9   : > { %v268_v46 = vpop.permute.xlu1 %267  ;;  %v293_v50 = vpop.permute.xlu0 %292 }
  0xfa   : > { %v255_v47 = vadd.f32 %v253_v45, %v240_v44 }
  0xfc   : > { %v270_v49 = vadd.f32 %v268_v46, %v255_v47 }
  0xfd   : > { %v308_v52 = vpop.permute.xlu1 %307 }
  0xfe   : > { %v280_v51 = vadd.f32 %v279_v48, %v270_v49 }
 0x100   : > { %v295_v53 = vadd.f32 %v293_v50, %v280_v51 }
 0x102   : > { %v310_v54 = vadd.f32 %v308_v52, %v295_v53 }
 0x104   : > { %533 = vmatmul.mubr.msk.f32.vlgmr.msra.gmra.mrb[0].mxu0 %vm319_vm1, %v310_v54 }
 0x1d7   : > { %v389_v55 = vpop.f32.mrb[0].mxu0 }
 0x1d8   : > { %393 = vst [vmem:[%s190_s28] sm:$0xff] %v389_v55  ;;  %v534_v56 = vpop.f32.mrb[1].mxu0 }
 0x1d9 PF: > { %s13_s16 = sadd.s32 1, %s633_s16   ;;  %s781_s12 = smov %s625_s14 }
 0x1da   : > { %p10_p7 = scmp.ge.s32.totalorder %s13_s16, 6   ;;  %s782_s13 = smov %s629_s15 }
 0x1db   : > { %s783_s14 = smov %s786_s17  ;;  %s784_s15 = smov %s790_s18 }
 0x1dc   :  { %12 = sbr.rel (!%p10_p7) target bundleno = 3 (0x3), region = 65 }

</bundles_post_ra>
